<compile_context>
chip_gen: v7x
topology: tpu7x:2x2x1
jax: 0.10.0
libtpu: 0.0.40
codegen_flags: <defaults>
</compile_context>

<pallas_src>
import functools
import math
from collections import defaultdict

import jax
import jax.numpy as jnp
from jax.experimental import pallas as pl
from jax.experimental.pallas import tpu as pltpu


DECAY = 0.9997
_EMA_COLS = 1024  # lane-dense packed width (multiple of 128)


def _round_up(x, m):
    return ((x + m - 1) // m) * m


def _cdiv(a, b):
    return (a + b - 1) // b


# ----------------------------------------------------------------------------
# Generation-aware tuning
# ----------------------------------------------------------------------------
@functools.lru_cache(maxsize=1)
def _device_kind():
    try:
        return jax.devices()[0].device_kind.lower()
    except Exception:
        return ""


@functools.lru_cache(maxsize=1)
def _vmem_capacity_bytes():
    try:
        return int(pltpu.get_tpu_info().vmem_capacity_bytes)
    except Exception:
        return (64 << 20) if "v7" in _device_kind() else (128 << 20)


@functools.lru_cache(maxsize=1)
def _ema_tuning():
    """(max block bytes per ref, vmem_limit_bytes) for the EMA kernel."""
    if _vmem_capacity_bytes() >= (100 << 20):   # v5e / v6e: 128 MiB VMEM
        return 8 << 20, 64 << 20                # up to bm=2048 rows of f32
    return 4 << 20, 48 << 20                    # v7x: 64 MiB VMEM -> bm<=1024


@functools.lru_cache(maxsize=1)
def _matmul_tuning():
    """(tm_cap, tn_cap, tk_cap, vmem_limit_bytes)."""
    kind = _device_kind()
    wide_mxu = ("v6" in kind) or ("v7" in kind)
    vmem_limit = (64 << 20) if _vmem_capacity_bytes() >= (100 << 20) else (48 << 20)
    if wide_mxu:
        return 256, 256, 1024, vmem_limit       # v6e / v7x: 2x256^2 MXU, bf16 tiles
    return 128, 256, 512, vmem_limit            # v5e (4x128^2 MXU) and older


def _choose_ema_bm(rows, itemsize):
    """Block rows for the packed EMA update."""
    block_bytes, _ = _ema_tuning()
    sublane = 8 * max(1, 4 // itemsize)         # 8 f32 / 16 bf16 / 32 int8
    cap_rows = max((block_bytes // (_EMA_COLS * itemsize)) // sublane * sublane,
                   sublane)
    if rows >= 2 * sublane:
        # Guarantee >= 2 grid blocks when possible so v7x shards across both TCs.
        bm = min(cap_rows, _round_up(_cdiv(rows, 2), sublane))
    else:
        bm = min(cap_rows, _round_up(max(rows, 1), sublane))
    return bm


# ----------------------------------------------------------------------------
# Pallas kernels
# ----------------------------------------------------------------------------
def _ema_kernel(e_ref, m_ref, o_ref, *, decay):
    # Lerp in f32 regardless of storage / model dtype.
    e = e_ref[...].astype(jnp.float32)
    m = m_ref[...].astype(jnp.float32)
    o_ref[...] = (decay * e + (1.0 - decay) * m).astype(o_ref.dtype)


def _linear_kernel(x_ref, w_ref, b_ref, o_ref, acc_ref):
    # x: [tm, tk] bf16, w: [tk, tn] bf16 (pre-transposed / pre-cast), b: [1, tn] f32
    k = pl.program_id(2)

    @pl.when(k == 0)
    def _():
        acc_ref[...] = jnp.zeros_like(acc_ref)

    acc_ref[...] += jnp.dot(x_ref[...], w_ref[...],
                            preferred_element_type=jnp.float32)

    @pl.when(k == pl.num_programs(2) - 1)
    def _():
        o_ref[...] = (acc_ref[...] + b_ref[...]).astype(o_ref.dtype)


# ----------------------------------------------------------------------------
# Packed EMA update (one jitted call per dtype group, EMA buffer donated)
# ----------------------------------------------------------------------------
@functools.partial(jax.jit, static_argnames=("decay", "bm"), donate_argnums=(0,))
def _packed_ema_update(e2, *m_parts, decay, bm):
    rows_pad, cols = e2.shape
    # Keep model values at (at least) their own precision for the lerp terms.
    m_dtype = jnp.result_type(e2.dtype, *[p.dtype for p in m_parts])
    m_flat = jnp.concatenate([jnp.ravel(p).astype(m_dtype) for p in m_parts])
    pad = rows_pad * cols - m_flat.size
    if pad:
        m_flat = jnp.pad(m_flat, (0, pad))
    m2 = m_flat.reshape(rows_pad, cols)

    _, ema_vmem_limit = _ema_tuning()
    grid = (rows_pad // bm,)
    return pl.pallas_call(
        functools.partial(_ema_kernel, decay=decay),
        out_shape=jax.ShapeDtypeStruct(e2.shape, e2.dtype),
        grid=grid,
        in_specs=[
            pl.BlockSpec((bm, cols), lambda i: (i, 0)),
            pl.BlockSpec((bm, cols), lambda i: (i, 0)),
        ],
        out_specs=pl.BlockSpec((bm, cols), lambda i: (i, 0)),
        input_output_aliases={0: 0},     # semantically in-place update
        compiler_params=pltpu.CompilerParams(
            dimension_semantics=("parallel",),
            vmem_limit_bytes=ema_vmem_limit,
        ),
    )(e2, m2)


# ----------------------------------------------------------------------------
# Tiled Linear forward: x[M,K] @ w_t[Kp,Np] + b  (w_t already bf16 + padded)
# ----------------------------------------------------------------------------
@functools.partial(jax.jit, static_argnames=("tm", "tn", "tk", "n"))
def _linear_call(x, w_t, b_row, *, tm, tn, tk, n):
    M, K = x.shape
    Kp, Np = w_t.shape
    Mp = _round_up(M, tm)
    xp = jnp.pad(x.astype(jnp.bfloat16), ((0, Mp - M), (0, Kp - K)))

    _, _, _, vmem_limit = _matmul_tuning()
    grid = (Mp // tm, Np // tn, Kp // tk)
    out = pl.pallas_call(
        _linear_kernel,
        out_shape=jax.ShapeDtypeStruct((Mp, Np), x.dtype),
        grid=grid,
        in_specs=[
            pl.BlockSpec((tm, tk), lambda i, j, k: (i, k)),
            pl.BlockSpec((tk, tn), lambda i, j, k: (k, j)),
            pl.BlockSpec((1, tn), lambda i, j, k: (0, j)),
        ],
        out_specs=pl.BlockSpec((tm, tn), lambda i, j, k: (i, j)),
        scratch_shapes=[pltpu.VMEM((tm, tn), jnp.float32)],
        compiler_params=pltpu.CompilerParams(
            dimension_semantics=("parallel", "parallel", "arbitrary"),
            vmem_limit_bytes=vmem_limit,
        ),
    )(xp, w_t, b_row)
    return out[:M, :n]


# ----------------------------------------------------------------------------
# ModelEma port
# ----------------------------------------------------------------------------
class ModelEmaJAX:
    """JAX/Pallas port of ModelEma; EMA state kept packed per dtype group."""

    def __init__(self, model_state, decay=0.9997, comat_ema=False):
        self.decay = float(decay)
        self.comat_ema = comat_ema
        self.set(model_state)
        # TODO(synk): the torch `device=` relocation has no Pallas equivalent;
        # arrays live on the default TPU device.

    # -- pack state once ------------------------------------------------------
    def set(self, model_state):
        state = {k: jnp.asarray(v) for k, v in model_state.items()}
        ema_keys = [k for k in state if self.comat_ema or k != "comatrix"]
        self._passthrough = {k: v for k, v in state.items() if k not in ema_keys}

        by_dtype = defaultdict(list)
        for k in ema_keys:
            by_dtype[jnp.dtype(state[k].dtype)].append(k)

        self._groups = {}
        self._packed = {}
        for dt, keys in by_dtype.items():
            shapes = [tuple(state[k].shape) for k in keys]
            sizes = [int(math.prod(s)) for s in shapes]
            offsets, off = [], 0
            for sz in sizes:
                offsets.append(off)
                off += sz
            total = off
            rows = max(_cdiv(total, _EMA_COLS), 1)
            bm = _choose_ema_bm(rows, dt.itemsize)
            rows_pad = _round_up(rows, bm)

            flat = jnp.concatenate([jnp.ravel(state[k]) for k in keys])
            pad = rows_pad * _EMA_COLS - total
            if pad:
                flat = jnp.pad(flat, (0, pad))
            self._packed[dt] = flat.reshape(rows_pad, _EMA_COLS)
            self._groups[dt] = dict(keys=keys, shapes=shapes, sizes=sizes,
                                    offsets=offsets, bm=bm)

        self._views = None
        self._weight_cache = None

    # -- EMA update ------------------------------------------------------------
    def update(self, model_state):
        for dt, meta in self._groups.items():
            m_parts = tuple(jnp.asarray(model_state[k]) for k in meta["keys"])
            self._packed[dt] = _packed_ema_update(
                self._packed[dt], *m_parts, decay=self.decay, bm=meta["bm"])
        if not self.comat_ema and "comatrix" in model_state:
            # copied verbatim, never lerped (matches torch: lerp then overwrite)
            self._passthrough["comatrix"] = jnp.asarray(model_state["comatrix"])
        self._views = None
        self._weight_cache = None

    # -- lazy per-tensor views -------------------------------------------------
    @property
    def state(self):
        if self._views is None:
            views = dict(self._passthrough)
            for dt, meta in self._groups.items():
                flat = self._packed[dt].reshape(-1)
                for k, shp, off, sz in zip(meta["keys"], meta["shapes"],
                                           meta["offsets"], meta["sizes"]):
                    views[k] = flat[off:off + sz].reshape(shp)
            self._views = views
        return self._views

    # -- forward (synthetic Linear: y = x @ W.T + b) ---------------------------
    def _weight_bias_padded(self):
        if self._weight_cache is None:
            st = self.state
            w = st["weight"]                       # (OUT, IN) PyTorch layout
            b = st["bias"]                         # (OUT,)
            n_out, k_in = w.shape
            _, tn_cap, tk_cap, _ = _matmul_tuning()
            tk = min(tk_cap, _round_up(k_in, 128))
            tn = min(tn_cap, _round_up(n_out, 128))
            kp, np_ = _round_up(k_in, tk), _round_up(n_out, tn)
            # transpose + bf16 cast + pad ONCE per EMA update (not per forward)
            w_t = jnp.pad(w.T.astype(jnp.bfloat16),
                          ((0, kp - k_in), (0, np_ - n_out)))
            b_row = jnp.pad(b.astype(jnp.float32).reshape(1, -1),
                            ((0, 0), (0, np_ - n_out)))
            self._weight_cache = (w_t, b_row, tk, tn, n_out)
        return self._weight_cache

    def forward(self, x):
        w_t, b_row, tk, tn, n_out = self._weight_bias_padded()
        tm_cap, _, _, _ = _matmul_tuning()
        tm = min(tm_cap, _round_up(x.shape[0], 8))
        return _linear_call(x, w_t, b_row, tm=tm, tn=tn, tk=tk, n=n_out)

    __call__ = forward


# ----------------------------------------------------------------------------
# Main
# ----------------------------------------------------------------------------
if __name__ == "__main__":
    key = jax.random.PRNGKey(0)
    k0, k1, k2, k3, k4, kx = jax.random.split(key, 6)

    BATCH, HIDDEN, OUT, NCLS = 8, 32, 32, 4

    # deterministic synthetic wrapped-model state_dict (weight, bias, comatrix)
    model_state = {
        "weight": jax.random.normal(k0, (OUT, HIDDEN), jnp.float32) * 0.1,
        "bias": jax.random.normal(k1, (OUT,), jnp.float32) * 0.1,
        "comatrix": jax.random.uniform(k2, (NCLS, NCLS), jnp.float32),
    }

    ema = ModelEmaJAX(model_state, decay=DECAY, comat_ema=False)

    # "one training step later" model state
    new_model_state = {
        "weight": jax.random.normal(k3, (OUT, HIDDEN), jnp.float32) * 0.1,
        "bias": jax.random.normal(k4, (OUT,), jnp.float32) * 0.1,
        "comatrix": jax.random.uniform(k2, (NCLS, NCLS), jnp.float32) + 1.0,
    }

    # EMA update (single fused, donated, input-aliased Pallas elementwise kernel)
    ema.update(new_model_state)

    # reference check for the EMA update
    ref_w = DECAY * model_state["weight"] + (1.0 - DECAY) * new_model_state["weight"]
    ref_b = DECAY * model_state["bias"] + (1.0 - DECAY) * new_model_state["bias"]
    assert jnp.allclose(ema.state["weight"], ref_w, atol=1e-6, rtol=1e-6)
    assert jnp.allclose(ema.state["bias"], ref_b, atol=1e-6, rtol=1e-6)
    assert jnp.allclose(ema.state["comatrix"], new_model_state["comatrix"])

    # forward pass through the EMA module (Pallas tiled bf16-MXU matmul kernel)
    x = jax.random.normal(kx, (BATCH, HIDDEN), jnp.float32)
    y = ema(x)
    y = jax.block_until_ready(y)

    # reference checks: tight vs bf16-rounded operands, loose vs full f32
    x_bf = x.astype(jnp.bfloat16).astype(jnp.float32)
    w_bf = ema.state["weight"].T.astype(jnp.bfloat16).astype(jnp.float32)
    ref_y_bf16 = x_bf @ w_bf + ema.state["bias"]
    ref_y_f32 = x @ ema.state["weight"].T + ema.state["bias"]
    assert y.shape == (BATCH, OUT)
    assert jnp.allclose(y, ref_y_bf16, atol=1e-5, rtol=1e-5)
    assert jnp.allclose(y, ref_y_f32, atol=3e-2, rtol=3e-2)

    # second update to exercise the donated/aliased in-place path again
    ema.update(model_state)
    jax.block_until_ready(ema.state["weight"])

    print("KERNEL_OK")
</pallas_src>

<mosaic_0001>
module attributes {stable_mosaic.version = 11 : i64} {
  func.func @_ema_kernel(%arg0: i32, %arg1: memref<8x1024xf32, #tpu.memory_space<vmem>>, %arg2: memref<8x1024xf32, #tpu.memory_space<vmem>>, %arg3: memref<8x1024xf32, #tpu.memory_space<vmem>>) attributes {dimension_semantics = [#tpu.dimension_semantics<parallel>], iteration_bounds = array<i64: 1>, scalar_prefetch = 0 : i64, scratch_operands = 0 : i64, tpu.core_type = #tpu.core_type<tc>, window_params = [{transform_indices = @transform_0, window_bounds = array<i64: 8, 1024>}, {transform_indices = @transform_1, window_bounds = array<i64: 8, 1024>}, {transform_indices = @transform_2, window_bounds = array<i64: 8, 1024>}]} {
    %c0 = arith.constant 0 : index
    %c0_0 = arith.constant 0 : index
    %0 = vector.load %arg1[%c0, %c0_0] : memref<8x1024xf32, #tpu.memory_space<vmem>>, vector<8x1024xf32>
    %c0_1 = arith.constant 0 : index
    %c0_2 = arith.constant 0 : index
    %1 = vector.load %arg2[%c0_1, %c0_2] : memref<8x1024xf32, #tpu.memory_space<vmem>>, vector<8x1024xf32>
    %cst = arith.constant 9.997000e-01 : f32
    %2 = vector.broadcast %cst : f32 to vector<8x1024xf32>
    %3 = arith.mulf %2, %0 : vector<8x1024xf32>
    %cst_3 = arith.constant 3.000000e-04 : f32
    %4 = vector.broadcast %cst_3 : f32 to vector<8x1024xf32>
    %5 = arith.mulf %4, %1 : vector<8x1024xf32>
    %6 = arith.addf %3, %5 : vector<8x1024xf32>
    %c0_4 = arith.constant 0 : index
    %c0_5 = arith.constant 0 : index
    %7 = vector.load %arg3[%c0_4, %c0_5] : memref<8x1024xf32, #tpu.memory_space<vmem>>, vector<8x1024xf32>
    tpu.vector_store %arg3[%c0_4, %c0_5], %6 {strides = array<i32>} : memref<8x1024xf32, #tpu.memory_space<vmem>>, vector<8x1024xf32>,
    return
  }
  func.func @transform_0(%arg0: i32) -> (i32, i32) {
    %c0_i32 = arith.constant 0 : i32
    %c0_i32_0 = arith.constant 0 : i32
    return %arg0, %c0_i32 : i32, i32
  }
  func.func @transform_1(%arg0: i32) -> (i32, i32) {
    %c0_i32 = arith.constant 0 : i32
    %c0_i32_0 = arith.constant 0 : i32
    return %arg0, %c0_i32 : i32, i32
  }
  func.func @transform_2(%arg0: i32) -> (i32, i32) {
    %c0_i32 = arith.constant 0 : i32
    %c0_i32_0 = arith.constant 0 : i32
    return %arg0, %c0_i32 : i32, i32
  }
}

</mosaic_0001>

<bundles_post_ra>
// kernel: _packed_ema_update.1
= control target key start
LH: loop header
LB: loop body
LE: loop exit
PB: predicated region body
PF: predicated region fallthrough
CT: control target
= control target key end

     0   :  { %7 = vsyncpa [#allocation3], 0  ;;  %s229_s0 = inlined_call_operand.hbm [shape: f32[8,1024], index: 0, kind: input, shape index: {}, may-alias: {0,2}]   ;;  %s230_s1 = inlined_call_operand.hbm [shape: f32[8,1024], index: 1, kind: input, shape index: {}]   ;;  %s231_s2 = inlined_call_operand.hbm [shape: f32[8,1024], index: 2, kind: output, shape index: {}, may-alias: {0,2}]  }
   0x1   :  { %8 = vsyncpa [#allocation6], 0 }
   0x2   :  { %9 = vsyncpa [#allocation4], 0  ;;  %s175_s9 = smov [#allocation2]   ;;  %s176_s11 = smov [#allocation5]  }
   0x3   :  { %s16_s10 = sshll.u32 %s175_s9, 4  ;;  %s26_s12 = sshll.u32 %s176_s11, 4  ;;  %s17_s10 = int_to_ptr.vmem [resolvable:$true] %s16_s10  ;;  %s27_s12 = int_to_ptr.vmem [resolvable:$true] %s26_s12 }
   0x4   :  { %s103_s15 = scalar_lea.hbm %s229_s0, 1024 }
   0x5   :  { %p104_p0 = scmp.ne.s32.totalorder %s229_s0, %s103_s15  ;;  %p107_p1 = scmp.lt.u32.totalorder %s103_s15, %s229_s0 }
   0x7   :  { %p109_p2 = pnand %p107_p1, %p104_p0 }
   0x9   :  { %112 = shalt.err (!%p109_p2)
}
   0xa   :  { %s113_s20 = scalar_lea.vmem %s17_s10, 1024  ;;  %p118_p4 = scmp.lt.s32.totalorder %s17_s10, %s17_s10 }
   0xb   :  { %p114_p3 = scmp.ne.s32.totalorder %s17_s10, %s113_s20  ;;  %p119_p5 = scmp.lt.s32.totalorder %s113_s20, %s113_s20 }
   0xd   :  { %p120_p6 = por %p119_p5, %p118_p4 }
   0xf   :  { %p121_p7 = pnand %p120_p6, %p114_p3 }
  0x11   :  { %124 = shalt.err (!%p121_p7)
}
  0x12   :  { %19 = dma.hbm_to_vmem [thread:$0]  %s229_s0, 1024, %s17_s10, [#allocation3]  }
  0x13   :  { %s125_s25 = scalar_lea.hbm %s230_s1, 1024 }
  0x14   :  { %p126_p8 = scmp.ne.s32.totalorder %s230_s1, %s125_s25  ;;  %p129_p9 = scmp.lt.u32.totalorder %s125_s25, %s230_s1 }
  0x16   :  { %p131_p10 = pnand %p129_p9, %p126_p8 }
  0x18   :  { %134 = shalt.err (!%p131_p10)
}
  0x19   :  { %s135_s30 = scalar_lea.vmem %s27_s12, 1024  ;;  %p140_p12 = scmp.lt.s32.totalorder %s27_s12, %s27_s12 }
  0x1a   :  { %p136_p11 = scmp.ne.s32.totalorder %s27_s12, %s135_s30  ;;  %p141_p13 = scmp.lt.s32.totalorder %s135_s30, %s135_s30 }
  0x1c   :  { %p142_p0 = por %p141_p13, %p140_p12 }
  0x1e   :  { %p143_p1 = pnand %p142_p0, %p136_p11 }
  0x20   :  { %146 = shalt.err (!%p143_p1)
}
  0x21   :  { %29 = dma.hbm_to_vmem [thread:$0]  %s230_s1, 1024, %s27_s12, [#allocation6]  }
  0x22   :  { %169 = dma.done.wait [#allocation3], 1024  }
  0x23   :  { %170 = vsyncadd [#allocation3], 4294966272 }
  0x24   :  { %171 = dma.done.wait [#allocation6], 1024  }
  0x25   :  { %172 = vsyncadd [#allocation6], 4294966272  ;;  %v36_v0 = vld [vmem:[#allocation2] sm:$0xff]  ;;  %v37_v2 = vld [vmem:[#allocation2 + $0x8] sm:$0xff]  ;;  %s177_s1 = smov [#allocation7]  }
  0x26   :  { %v44_v1 = vld [vmem:[#allocation5] sm:$0xff]  ;;  %v52_v3 = vmul.f32 0.9997, %v36_v0  ;;  %v45_v5 = vld [vmem:[#allocation5 + $0x8] sm:$0xff]  ;;  %v38_v6 = vld [vmem:[#allocation2 + $0x10] sm:$0xff]  ;;  %s90_s4 = sshll.u32 %s177_s1, 4  ;;  %s91_s4 = int_to_ptr.vmem [resolvable:$true] %s90_s4 }
  0x27   :  { %v60_v4 = vmul.f32 0.0003, %v44_v1  ;;  %v53_v7 = vmul.f32 0.9997, %v37_v2  ;;  %v61_v8 = vmul.f32 0.0003, %v45_v5  ;;  %p152_p3 = scmp.lt.s32.totalorder %s91_s4, %s91_s4 }
  0x28   :  { %v46_v9 = vld [vmem:[#allocation5 + $0x10] sm:$0xff]  ;;  %v39_v10 = vld [vmem:[#allocation2 + $0x18] sm:$0xff]  ;;  %v54_v12 = vmul.f32 0.9997, %v38_v6  ;;  %v40_v15 = vld [vmem:[#allocation2 + $0x20] sm:$0xff]  ;;  %s147_s5 = scalar_lea.vmem %s91_s4, 1024 }
  0x29   :  { %v68_v11 = vadd.f32 %v60_v4, %v52_v3  ;;  %v62_v13 = vmul.f32 0.0003, %v46_v9  ;;  %v47_v14 = vld [vmem:[#allocation5 + $0x18] sm:$0xff]  ;;  %v69_v16 = vadd.f32 %v61_v8, %v53_v7  ;;  %v55_v17 = vmul.f32 0.9997, %v39_v10  ;;  %v48_v19 = vld [vmem:[#allocation5 + $0x20] sm:$0xff]  ;;  %p148_p2 = scmp.ne.s32.totalorder %s91_s4, %s147_s5  ;;  %p153_p4 = scmp.lt.s32.totalorder %s147_s5, %s147_s5 }
  0x2a   :  { %v63_v18 = vmul.f32 0.0003, %v47_v14  ;;  %v41_v20 = vld [vmem:[#allocation2 + $0x28] sm:$0xff]  ;;  %v56_v22 = vmul.f32 0.9997, %v40_v15  ;;  %v42_v25 = vld [vmem:[#allocation2 + $0x30] sm:$0xff] }
  0x2b   :  { %76 = vst [vmem:[#allocation7] sm:$0xff] %v68_v11  ;;  %v70_v21 = vadd.f32 %v62_v13, %v54_v12  ;;  %v64_v23 = vmul.f32 0.0003, %v48_v19  ;;  %v49_v24 = vld [vmem:[#allocation5 + $0x28] sm:$0xff]  ;;  %77 = vst [vmem:[#allocation7 + $0x8] sm:$0xff] %v69_v16  ;;  %v50_v29 = vld [vmem:[#allocation5 + $0x30] sm:$0xff]  ;;  %p154_p5 = por %p153_p4, %p152_p3 }
  0x2c   :  { %v71_v26 = vadd.f32 %v63_v18, %v55_v17  ;;  %v57_v27 = vmul.f32 0.9997, %v41_v20  ;;  %v65_v28 = vmul.f32 0.0003, %v49_v24  ;;  %v43_v30 = vld [vmem:[#allocation2 + $0x38] sm:$0xff] }
  0x2d   :  { %78 = vst [vmem:[#allocation7 + $0x10] sm:$0xff] %v70_v21  ;;  %v72_v31 = vadd.f32 %v64_v23, %v56_v22  ;;  %v58_v32 = vmul.f32 0.9997, %v42_v25  ;;  %v66_v33 = vmul.f32 0.0003, %v50_v29  ;;  %v51_v34 = vld [vmem:[#allocation5 + $0x38] sm:$0xff]  ;;  %p155_p6 = pnand %p154_p5, %p148_p2 }
  0x2e   :  { %79 = vst [vmem:[#allocation7 + $0x18] sm:$0xff] %v71_v26  ;;  %v73_v35 = vadd.f32 %v65_v28, %v57_v27  ;;  %v59_v36 = vmul.f32 0.9997, %v43_v30  ;;  %v67_v37 = vmul.f32 0.0003, %v51_v34 }
  0x2f   :  { %80 = vst [vmem:[#allocation7 + $0x20] sm:$0xff] %v72_v31  ;;  %v74_v38 = vadd.f32 %v66_v33, %v58_v32 }
  0x30   :  { %81 = vst [vmem:[#allocation7 + $0x28] sm:$0xff] %v73_v35  ;;  %v75_v39 = vadd.f32 %v67_v37, %v59_v36 }
  0x31   :  { %82 = vst [vmem:[#allocation7 + $0x30] sm:$0xff] %v74_v38 }
  0x32   :  { %83 = vst [vmem:[#allocation7 + $0x38] sm:$0xff] %v75_v39 }
  0x33   :  { %158 = shalt.err (!%p155_p6)
}
  0x34   :  { %s159_s8 = scalar_lea.hbm %s231_s2, 1024 }
  0x35   :  { %p160_p7 = scmp.ne.s32.totalorder %s231_s2, %s159_s8  ;;  %p163_p8 = scmp.lt.u32.totalorder %s159_s8, %s231_s2 }
  0x37   :  { %p165_p9 = pnand %p163_p8, %p160_p7 }
  0x39   :  { %168 = shalt.err (!%p165_p9)
}
  0x3a   :  { %93 = dma.vmem_to_hbm [thread:$0]  %s91_s4, 1024, %s231_s2, [#allocation4]  }
  0x3b   :  { %173 = dma.done.wait [#allocation4], 1024  }
  0x3c   :  { %174 = vsyncadd [#allocation4], 4294966272 }
  0x3d   :  { %97 = vsyncpa [#allocation3], 1 }
  0x3e   :  { %98 = vsyncpa [#allocation6], 1 }
  0x3f   :  { %99 = vsyncpa [#allocation4], 1 }

</bundles_post_ra>
